<compile_context>
chip_gen: v5e
topology: v5e:2x2
jax: 0.10.0
libtpu: 0.0.40
codegen_flags: <defaults>
</compile_context>

<pallas_src>
import math

import numpy as np
import jax
import jax.numpy as jnp
from jax.experimental import pallas as pl
from jax.experimental.pallas import tpu as pltpu

# ----------------------------- configuration ------------------------------
D_MODEL = 32
D_FF = 64
NUM_HEADS = 4
D_STATE = D_MODEL // NUM_HEADS
SEQ = 8
BATCH = 2
N_TOK = BATCH * SEQ          # flattened (batch, seq) rows = 16
SW = NUM_HEADS * N_TOK       # all-head score columns = 64
EPS = 1e-5
NEG_INF = -1e10

# ------------- packed parameter buffer layout ([P_ROWS, 128], f32) ----------
P_COLS = 128                 # lane-aligned (unmasked DMA)
R_WQKV = 0                   # [D_MODEL, 3*D_MODEL]  rows   0..31  (Q pre-scaled)
R_W1   = R_WQKV + D_MODEL    # [D_MODEL, D_FF]       rows  32..63
R_WO   = R_W1 + D_MODEL      # [D_MODEL, D_MODEL]    rows  64..95
R_W2   = R_WO + D_MODEL      # [D_FF, D_MODEL]       rows  96..159
R_BLK  = R_W2 + D_FF         # [SW, D_MODEL]         rows 160..223 (0/1 selector)
R_ADDM = R_BLK + SW          # [N_TOK, SW]           rows 224..239 (0 / -1e10)
R_BQKV = R_ADDM + N_TOK      # row 240
R_LN1S = R_BQKV + 1          # row 241
R_LN1B = R_LN1S + 1          # row 242
R_LN2S = R_LN1B + 1          # row 243
R_LN2B = R_LN2S + 1          # row 244
R_BO   = R_LN2B + 1          # row 245
R_B1   = R_BO + 1            # row 246
R_B2   = R_B1 + 1            # row 247
P_ROWS = R_B2 + 1            # 248 (multiple of 8)


def _layernorm(x, scale, shift):
    mean = jnp.mean(x, axis=-1, keepdims=True)
    var = jnp.mean((x - mean) ** 2, axis=-1, keepdims=True)
    return scale * ((x - mean) * jax.lax.rsqrt(var + EPS)) + shift


# --------------------------------- kernel ----------------------------------
def block_kernel(x_ref, p_ref, out_ref):
    x = x_ref[...]                                            # [16, 32]

    # static slices of the packed parameter buffer (zero-cost ref views)
    wqkv = p_ref[R_WQKV:R_WQKV + D_MODEL, 0:3 * D_MODEL]      # [32, 96]
    w1   = p_ref[R_W1:R_W1 + D_MODEL, 0:D_FF]                 # [32, 64]
    wo   = p_ref[R_WO:R_WO + D_MODEL, 0:D_MODEL]              # [32, 32]
    w2   = p_ref[R_W2:R_W2 + D_FF, 0:D_MODEL]                 # [64, 32]
    blk  = p_ref[R_BLK:R_BLK + SW, 0:D_MODEL]                 # [64, 32] 0/1
    addm = p_ref[R_ADDM:R_ADDM + N_TOK, 0:SW]                 # [16, 64] 0/-1e10
    bqkv = p_ref[R_BQKV:R_BQKV + 1, 0:3 * D_MODEL]            # [1, 96]
    ln1s = p_ref[R_LN1S:R_LN1S + 1, 0:D_MODEL]
    ln1b = p_ref[R_LN1B:R_LN1B + 1, 0:D_MODEL]
    ln2s = p_ref[R_LN2S:R_LN2S + 1, 0:D_MODEL]
    ln2b = p_ref[R_LN2B:R_LN2B + 1, 0:D_MODEL]
    bo   = p_ref[R_BO:R_BO + 1, 0:D_MODEL]
    b1   = p_ref[R_B1:R_B1 + 1, 0:D_FF]
    b2   = p_ref[R_B2:R_B2 + 1, 0:D_MODEL]

    # ---- norm1 + fused QKV projection (1/sqrt(d_k) folded into Q cols) ----
    xn = _layernorm(x, ln1s, ln1b)
    qkv = jnp.dot(xn, wqkv, preferred_element_type=jnp.float32) + bqkv   # [16, 96]
    q = qkv[:, 0:D_MODEL]
    k = qkv[:, D_MODEL:2 * D_MODEL]
    v = qkv[:, 2 * D_MODEL:3 * D_MODEL]

    # ---- block-diagonal K / V operands (precomputed 0/1 selector) ----
    # row r = head*N_TOK + token; column c = feature.  kb/vb keep only the
    # features belonging to head r//N_TOK, so ONE matmul does all heads and
    # head outputs land directly in the [N, H*D_STATE] layout.
    k_rep = jnp.concatenate([k] * NUM_HEADS, axis=0)          # [64, 32]
    v_rep = jnp.concatenate([v] * NUM_HEADS, axis=0)          # [64, 32]
    kb = blk * k_rep
    vb = blk * v_rep

    # all-head scores: q @ kb^T done inside the MXU (no explicit transpose)
    scores = jax.lax.dot_general(
        q, kb, (((1,), (1,)), ((), ())),
        preferred_element_type=jnp.float32)                   # [16, 64]

    # additive causal + same-batch mask (precomputed constant)
    scores = scores + addm

    # ---- per-head-block (segmented) softmax numerator ----
    parts = []
    for h in range(NUM_HEADS):
        s_h = scores[:, h * N_TOK:(h + 1) * N_TOK]            # [16, 16]
        m_h = jnp.max(s_h, axis=-1, keepdims=True)            # per-head row max
        parts.append(jnp.exp(s_h - m_h))
    p = jnp.concatenate(parts, axis=1)                        # [16, 64]

    # numerator / denominator as two matmuls (blk doubles as the block-sum op)
    o_un  = jnp.dot(p, vb, preferred_element_type=jnp.float32)   # [16, 32]
    denom = jnp.dot(p, blk, preferred_element_type=jnp.float32)  # [16, 32]
    attn = o_un * pl.reciprocal(denom, approx=False)          # exact: stays in 1e-4 tol

    # ---- output projection (do_residual=False -> no residual adds) ----
    attn = jnp.dot(attn, wo, preferred_element_type=jnp.float32) + bo

    # ---- norm2 + MLP: Linear -> ReLU -> Linear ----
    y = _layernorm(attn, ln2s, ln2b)
    h1 = jnp.maximum(jnp.dot(y, w1, preferred_element_type=jnp.float32) + b1, 0.0)
    out = jnp.dot(h1, w2, preferred_element_type=jnp.float32) + b2

    out_ref[...] = out.astype(out_ref.dtype)


# --------------------------------- packing ----------------------------------
def pack_params(params):
    """Build the [P_ROWS, 128] weight + constant buffer.  Call ONCE, host-side."""
    (ln1_s, ln1_b, wqkv, bqkv, wo, bo, ln2_s, ln2_b, w1, b1, w2, b2) = params
    inv = 1.0 / math.sqrt(D_STATE)
    wqkv = np.asarray(wqkv, np.float32).copy()
    bqkv = np.asarray(bqkv, np.float32).copy()
    wqkv[:, :D_MODEL] *= inv                 # fold 1/sqrt(d_k) into Q weights
    bqkv[:D_MODEL] *= inv                    # ... and Q bias

    # block-diagonal head selector [SW, D_MODEL]
    r = np.arange(SW)[:, None]
    c = np.arange(D_MODEL)[None, :]
    blk = ((r // N_TOK) == (c // D_STATE)).astype(np.float32)

    # additive causal + same-batch mask [N_TOK, SW] (column = head*N_TOK + token)
    ri = np.arange(N_TOK)[:, None]
    ci = np.arange(SW)[None, :]
    t = ci % N_TOK
    valid = ((t // SEQ) == (ri // SEQ)) & ((t % SEQ) <= (ri % SEQ))
    addm = np.where(valid, 0.0, NEG_INF).astype(np.float32)

    P = np.zeros((P_ROWS, P_COLS), np.float32)
    P[R_WQKV:R_WQKV + D_MODEL, 0:3 * D_MODEL] = wqkv
    P[R_W1:R_W1 + D_MODEL, 0:D_FF] = np.asarray(w1, np.float32)
    P[R_WO:R_WO + D_MODEL, 0:D_MODEL] = np.asarray(wo, np.float32)
    P[R_W2:R_W2 + D_FF, 0:D_MODEL] = np.asarray(w2, np.float32)
    P[R_BLK:R_BLK + SW, 0:D_MODEL] = blk
    P[R_ADDM:R_ADDM + N_TOK, 0:SW] = addm
    P[R_BQKV, 0:3 * D_MODEL] = bqkv
    P[R_LN1S, 0:D_MODEL] = np.asarray(ln1_s, np.float32)
    P[R_LN1B, 0:D_MODEL] = np.asarray(ln1_b, np.float32)
    P[R_LN2S, 0:D_MODEL] = np.asarray(ln2_s, np.float32)
    P[R_LN2B, 0:D_MODEL] = np.asarray(ln2_b, np.float32)
    P[R_BO, 0:D_MODEL] = np.asarray(bo, np.float32)
    P[R_B1, 0:D_FF] = np.asarray(b1, np.float32)
    P[R_B2, 0:D_MODEL] = np.asarray(b2, np.float32)
    return jnp.asarray(P)


# --------------------------------- wrapper ----------------------------------
@jax.jit
def block_forward(x, packed):
    bs, seq, d_model = x.shape
    n = bs * seq
    x2 = x.reshape(n, d_model)
    out2 = pl.pallas_call(
        block_kernel,
        out_shape=jax.ShapeDtypeStruct((n, d_model), x.dtype),
        grid=(1,),
        in_specs=[pl.BlockSpec((n, d_model), lambda i: (0, 0)),
                  pl.BlockSpec((P_ROWS, P_COLS), lambda i: (0, 0))],
        out_specs=pl.BlockSpec((n, d_model), lambda i: (0, 0)),
        compiler_params=pltpu.CompilerParams(
            dimension_semantics=("arbitrary",)),
    )(x2, packed)
    return out2.reshape(bs, seq, d_model)


# --------------------------- pure-JAX reference ----------------------------
def block_reference(x, params):
    (ln1_s, ln1_b, wqkv, bqkv, wo, bo, ln2_s, ln2_b, w1, b1, w2, b2) = params

    def ln(t, s, b):
        mean = jnp.mean(t, -1, keepdims=True)
        var = jnp.mean((t - mean) ** 2, -1, keepdims=True)
        return s * ((t - mean) * jax.lax.rsqrt(var + EPS)) + b

    # causal mask from `mask(n)`: i >= j
    i = jnp.arange(SEQ)[:, None]
    j = jnp.arange(SEQ)[None, :]
    m = (i >= j).astype(jnp.float32)

    xn = ln(x, ln1_s, ln1_b)
    qkv = xn @ wqkv + bqkv
    q, k, v = jnp.split(qkv, 3, axis=-1)

    def split_heads(t):
        b, s, _ = t.shape
        return t.reshape(b, s, NUM_HEADS, D_STATE).transpose(0, 2, 1, 3)

    q, k, v = map(split_heads, (q, k, v))
    scores = jnp.einsum("bhqd,bhkd->bhqk", q, k) / math.sqrt(D_STATE)
    scores = scores * m - (1.0 - m) * 1e10
    w = jax.nn.softmax(scores, axis=-1)
    o = jnp.einsum("bhqk,bhkd->bhqd", w, v)
    o = o.transpose(0, 2, 1, 3).reshape(x.shape[0], x.shape[1], D_MODEL)
    o = o @ wo + bo
    y = ln(o, ln2_s, ln2_b)
    h1 = jnp.maximum(y @ w1 + b1, 0.0)
    return h1 @ w2 + b2


# --------------------------------- main ------------------------------------
if __name__ == "__main__":
    key = jax.random.PRNGKey(0)
    keys = jax.random.split(key, 8)
    std = 0.02

    # Parameter init matching the PyTorch module's __init__:
    # Conv1d weights ~ N(0, 0.02), biases = 0; LayerNorm scale=1, shift=0.
    ln1_s = jnp.ones((D_MODEL,), jnp.float32)
    ln1_b = jnp.zeros((D_MODEL,), jnp.float32)
    ln2_s = jnp.ones((D_MODEL,), jnp.float32)
    ln2_b = jnp.zeros((D_MODEL,), jnp.float32)
    wqkv = std * jax.random.normal(keys[0], (D_MODEL, 3 * D_MODEL), jnp.float32)
    bqkv = jnp.zeros((3 * D_MODEL,), jnp.float32)
    wo = std * jax.random.normal(keys[1], (D_MODEL, D_MODEL), jnp.float32)
    bo = jnp.zeros((D_MODEL,), jnp.float32)
    w1 = std * jax.random.normal(keys[2], (D_MODEL, D_FF), jnp.float32)
    b1 = jnp.zeros((D_FF,), jnp.float32)
    w2 = std * jax.random.normal(keys[3], (D_FF, D_MODEL), jnp.float32)
    b2 = jnp.zeros((D_MODEL,), jnp.float32)

    params = (ln1_s, ln1_b, wqkv, bqkv, wo, bo, ln2_s, ln2_b, w1, b1, w2, b2)

    # Pack weights + static masks ONCE (outside the jitted forward path).
    packed = jax.block_until_ready(pack_params(params))

    x = jax.random.normal(keys[4], (BATCH, SEQ, D_MODEL), jnp.float32)

    out = block_forward(x, packed)
    out = jax.block_until_ready(out)

    ref = block_reference(x, params)
    assert out.shape == (BATCH, SEQ, D_MODEL)
    assert jnp.allclose(out, ref, atol=1e-4, rtol=1e-4), (
        float(jnp.max(jnp.abs(out - ref))))

    print("KERNEL_OK")
</pallas_src>

<mosaic_0001>
module attributes {stable_mosaic.version = 11 : i64} {
  func.func @block_kernel(%arg0: i32, %arg1: memref<16x32xf32, #tpu.memory_space<vmem>>, %arg2: memref<248x128xf32, #tpu.memory_space<vmem>>, %arg3: memref<16x32xf32, #tpu.memory_space<vmem>>) attributes {dimension_semantics = [#tpu.dimension_semantics<arbitrary>], iteration_bounds = array<i64: 1>, scalar_prefetch = 0 : i64, scratch_operands = 0 : i64, tpu.core_type = #tpu.core_type<tc>, window_params = [{pipeline_mode = #tpu.pipeline_mode<synchronous>, transform_indices = @transform_0, window_bounds = array<i64: 16, 32>}, {pipeline_mode = #tpu.pipeline_mode<synchronous>, transform_indices = @transform_1, window_bounds = array<i64: 248, 128>}, {pipeline_mode = #tpu.pipeline_mode<synchronous>, transform_indices = @transform_2, window_bounds = array<i64: 16, 32>}]} {
    %c0 = arith.constant 0 : index
    %c0_0 = arith.constant 0 : index
    %0 = vector.load %arg1[%c0, %c0_0] : memref<16x32xf32, #tpu.memory_space<vmem>>, vector<16x32xf32>
    %c0_1 = arith.constant 0 : index
    %c0_2 = arith.constant 0 : index
    %1 = vector.load %arg2[%c0_1, %c0_2] : memref<248x128xf32, #tpu.memory_space<vmem>>, vector<32x96xf32>
    %c32 = arith.constant 32 : index
    %c0_3 = arith.constant 0 : index
    %2 = vector.load %arg2[%c32, %c0_3] : memref<248x128xf32, #tpu.memory_space<vmem>>, vector<32x64xf32>
    %c64 = arith.constant 64 : index
    %c0_4 = arith.constant 0 : index
    %3 = vector.load %arg2[%c64, %c0_4] : memref<248x128xf32, #tpu.memory_space<vmem>>, vector<32x32xf32>
    %c96 = arith.constant 96 : index
    %c0_5 = arith.constant 0 : index
    %4 = vector.load %arg2[%c96, %c0_5] : memref<248x128xf32, #tpu.memory_space<vmem>>, vector<64x32xf32>
    %c160 = arith.constant 160 : index
    %c0_6 = arith.constant 0 : index
    %5 = vector.load %arg2[%c160, %c0_6] : memref<248x128xf32, #tpu.memory_space<vmem>>, vector<64x32xf32>
    %c224 = arith.constant 224 : index
    %c0_7 = arith.constant 0 : index
    %6 = vector.load %arg2[%c224, %c0_7] : memref<248x128xf32, #tpu.memory_space<vmem>>, vector<16x64xf32>
    %c240 = arith.constant 240 : index
    %c0_8 = arith.constant 0 : index
    %7 = vector.load %arg2[%c240, %c0_8] : memref<248x128xf32, #tpu.memory_space<vmem>>, vector<1x96xf32>
    %c241 = arith.constant 241 : index
    %c0_9 = arith.constant 0 : index
    %8 = vector.load %arg2[%c241, %c0_9] : memref<248x128xf32, #tpu.memory_space<vmem>>, vector<1x32xf32>
    %c242 = arith.constant 242 : index
    %c0_10 = arith.constant 0 : index
    %9 = vector.load %arg2[%c242, %c0_10] : memref<248x128xf32, #tpu.memory_space<vmem>>, vector<1x32xf32>
    %c243 = arith.constant 243 : index
    %c0_11 = arith.constant 0 : index
    %10 = vector.load %arg2[%c243, %c0_11] : memref<248x128xf32, #tpu.memory_space<vmem>>, vector<1x32xf32>
    %c244 = arith.constant 244 : index
    %c0_12 = arith.constant 0 : index
    %11 = vector.load %arg2[%c244, %c0_12] : memref<248x128xf32, #tpu.memory_space<vmem>>, vector<1x32xf32>
    %c245 = arith.constant 245 : index
    %c0_13 = arith.constant 0 : index
    %12 = vector.load %arg2[%c245, %c0_13] : memref<248x128xf32, #tpu.memory_space<vmem>>, vector<1x32xf32>
    %c246 = arith.constant 246 : index
    %c0_14 = arith.constant 0 : index
    %13 = vector.load %arg2[%c246, %c0_14] : memref<248x128xf32, #tpu.memory_space<vmem>>, vector<1x64xf32>
    %c247 = arith.constant 247 : index
    %c0_15 = arith.constant 0 : index
    %14 = vector.load %arg2[%c247, %c0_15] : memref<248x128xf32, #tpu.memory_space<vmem>>, vector<1x32xf32>
    %cst = arith.constant dense<0.000000e+00> : vector<16xf32>
    %15 = vector.multi_reduction <add>, %0, %cst [1] : vector<16x32xf32> to vector<16xf32>
    %16 = vector.shape_cast %15 : vector<16xf32> to vector<16x1xf32>
    %cst_16 = arith.constant 3.200000e+01 : f32
    %17 = vector.broadcast %cst_16 : f32 to vector<16x1xf32>
    %18 = arith.divf %16, %17 : vector<16x1xf32>
    %19 = vector.broadcast %18 : vector<16x1xf32> to vector<16x32xf32>
    %20 = arith.subf %0, %19 : vector<16x32xf32>
    %21 = arith.mulf %20, %20 : vector<16x32xf32>
    %cst_17 = arith.constant dense<0.000000e+00> : vector<16xf32>
    %22 = vector.multi_reduction <add>, %21, %cst_17 [1] : vector<16x32xf32> to vector<16xf32>
    %23 = vector.shape_cast %22 : vector<16xf32> to vector<16x1xf32>
    %cst_18 = arith.constant 3.200000e+01 : f32
    %24 = vector.broadcast %cst_18 : f32 to vector<16x1xf32>
    %25 = arith.divf %23, %24 : vector<16x1xf32>
    %26 = vector.broadcast %18 : vector<16x1xf32> to vector<16x32xf32>
    %27 = arith.subf %0, %26 : vector<16x32xf32>
    %cst_19 = arith.constant 9.99999974E-6 : f32
    %28 = vector.broadcast %cst_19 : f32 to vector<16x1xf32>
    %29 = arith.addf %25, %28 : vector<16x1xf32>
    %30 = math.rsqrt %29 : vector<16x1xf32>
    %31 = vector.broadcast %30 : vector<16x1xf32> to vector<16x32xf32>
    %32 = arith.mulf %27, %31 : vector<16x32xf32>
    %33 = vector.broadcast %8 : vector<1x32xf32> to vector<16x32xf32>
    %34 = arith.mulf %33, %32 : vector<16x32xf32>
    %35 = vector.broadcast %9 : vector<1x32xf32> to vector<16x32xf32>
    %36 = arith.addf %34, %35 : vector<16x32xf32>
    %cst_20 = arith.constant dense<0.000000e+00> : vector<16x96xf32>
    %37 = tpu.matmul %36, %1, %cst_20 {dimension_numbers = #tpu.dot_dimension_numbers<[1], [0], [0], [1], [0, 0, 1, 1], [], []>} : vector<16x32xf32>, vector<32x96xf32>, vector<16x96xf32> -> vector<16x96xf32>
    %38 = vector.broadcast %7 : vector<1x96xf32> to vector<16x96xf32>
    %39 = arith.addf %37, %38 : vector<16x96xf32>
    %40 = vector.extract_strided_slice %39 {offsets = [0, 0], sizes = [16, 32], strides = [1, 1]} : vector<16x96xf32> to vector<16x32xf32>
    %41 = vector.extract_strided_slice %39 {offsets = [0, 32], sizes = [16, 32], strides = [1, 1]} : vector<16x96xf32> to vector<16x32xf32>
    %42 = vector.extract_strided_slice %39 {offsets = [0, 64], sizes = [16, 32], strides = [1, 1]} : vector<16x96xf32> to vector<16x32xf32>
    %43 = tpu.concatenate %41, %41, %41, %41 in 0 : vector<16x32xf32>, vector<16x32xf32>, vector<16x32xf32>, vector<16x32xf32> -> vector<64x32xf32>
    %44 = tpu.concatenate %42, %42, %42, %42 in 0 : vector<16x32xf32>, vector<16x32xf32>, vector<16x32xf32>, vector<16x32xf32> -> vector<64x32xf32>
    %45 = arith.mulf %5, %43 : vector<64x32xf32>
    %46 = arith.mulf %5, %44 : vector<64x32xf32>
    %cst_21 = arith.constant dense<0.000000e+00> : vector<16x64xf32>
    %47 = tpu.matmul %40, %45, %cst_21 {dimension_numbers = #tpu.dot_dimension_numbers<[1], [1], [0], [0], [0, 0, 1, 0], [], []>} : vector<16x32xf32>, vector<64x32xf32>, vector<16x64xf32> -> vector<16x64xf32>
    %48 = arith.addf %47, %6 : vector<16x64xf32>
    %49 = vector.extract_strided_slice %48 {offsets = [0, 0], sizes = [16, 16], strides = [1, 1]} : vector<16x64xf32> to vector<16x16xf32>
    %cst_22 = arith.constant dense<0xFF800000> : vector<16xf32>
    %50 = vector.multi_reduction <maximumf>, %49, %cst_22 [1] : vector<16x16xf32> to vector<16xf32>
    %51 = vector.shape_cast %50 : vector<16xf32> to vector<16x1xf32>
    %52 = vector.broadcast %51 : vector<16x1xf32> to vector<16x16xf32>
    %53 = arith.subf %49, %52 : vector<16x16xf32>
    %54 = math.exp %53 : vector<16x16xf32>
    %55 = vector.extract_strided_slice %48 {offsets = [0, 16], sizes = [16, 16], strides = [1, 1]} : vector<16x64xf32> to vector<16x16xf32>
    %cst_23 = arith.constant dense<0xFF800000> : vector<16xf32>
    %56 = vector.multi_reduction <maximumf>, %55, %cst_23 [1] : vector<16x16xf32> to vector<16xf32>
    %57 = vector.shape_cast %56 : vector<16xf32> to vector<16x1xf32>
    %58 = vector.broadcast %57 : vector<16x1xf32> to vector<16x16xf32>
    %59 = arith.subf %55, %58 : vector<16x16xf32>
    %60 = math.exp %59 : vector<16x16xf32>
    %61 = vector.extract_strided_slice %48 {offsets = [0, 32], sizes = [16, 16], strides = [1, 1]} : vector<16x64xf32> to vector<16x16xf32>
    %cst_24 = arith.constant dense<0xFF800000> : vector<16xf32>
    %62 = vector.multi_reduction <maximumf>, %61, %cst_24 [1] : vector<16x16xf32> to vector<16xf32>
    %63 = vector.shape_cast %62 : vector<16xf32> to vector<16x1xf32>
    %64 = vector.broadcast %63 : vector<16x1xf32> to vector<16x16xf32>
    %65 = arith.subf %61, %64 : vector<16x16xf32>
    %66 = math.exp %65 : vector<16x16xf32>
    %67 = vector.extract_strided_slice %48 {offsets = [0, 48], sizes = [16, 16], strides = [1, 1]} : vector<16x64xf32> to vector<16x16xf32>
    %cst_25 = arith.constant dense<0xFF800000> : vector<16xf32>
    %68 = vector.multi_reduction <maximumf>, %67, %cst_25 [1] : vector<16x16xf32> to vector<16xf32>
    %69 = vector.shape_cast %68 : vector<16xf32> to vector<16x1xf32>
    %70 = vector.broadcast %69 : vector<16x1xf32> to vector<16x16xf32>
    %71 = arith.subf %67, %70 : vector<16x16xf32>
    %72 = math.exp %71 : vector<16x16xf32>
    %73 = tpu.concatenate %54, %60, %66, %72 in 1 : vector<16x16xf32>, vector<16x16xf32>, vector<16x16xf32>, vector<16x16xf32> -> vector<16x64xf32>
    %cst_26 = arith.constant dense<0.000000e+00> : vector<16x32xf32>
    %74 = tpu.matmul %73, %46, %cst_26 {dimension_numbers = #tpu.dot_dimension_numbers<[1], [0], [0], [1], [0, 0, 1, 1], [], []>} : vector<16x64xf32>, vector<64x32xf32>, vector<16x32xf32> -> vector<16x32xf32>
    %cst_27 = arith.constant dense<0.000000e+00> : vector<16x32xf32>
    %75 = tpu.matmul %73, %5, %cst_27 {dimension_numbers = #tpu.dot_dimension_numbers<[1], [0], [0], [1], [0, 0, 1, 1], [], []>} : vector<16x64xf32>, vector<64x32xf32>, vector<16x32xf32> -> vector<16x32xf32>
    %76 = tpu.reciprocal %75 : vector<16x32xf32> -> vector<16x32xf32>
    %77 = arith.mulf %74, %76 : vector<16x32xf32>
    %cst_28 = arith.constant dense<0.000000e+00> : vector<16x32xf32>
    %78 = tpu.matmul %77, %3, %cst_28 {dimension_numbers = #tpu.dot_dimension_numbers<[1], [0], [0], [1], [0, 0, 1, 1], [], []>} : vector<16x32xf32>, vector<32x32xf32>, vector<16x32xf32> -> vector<16x32xf32>
    %79 = vector.broadcast %12 : vector<1x32xf32> to vector<16x32xf32>
    %80 = arith.addf %78, %79 : vector<16x32xf32>
    %cst_29 = arith.constant dense<0.000000e+00> : vector<16xf32>
    %81 = vector.multi_reduction <add>, %80, %cst_29 [1] : vector<16x32xf32> to vector<16xf32>
    %82 = vector.shape_cast %81 : vector<16xf32> to vector<16x1xf32>
    %cst_30 = arith.constant 3.200000e+01 : f32
    %83 = vector.broadcast %cst_30 : f32 to vector<16x1xf32>
    %84 = arith.divf %82, %83 : vector<16x1xf32>
    %85 = vector.broadcast %84 : vector<16x1xf32> to vector<16x32xf32>
    %86 = arith.subf %80, %85 : vector<16x32xf32>
    %87 = arith.mulf %86, %86 : vector<16x32xf32>
    %cst_31 = arith.constant dense<0.000000e+00> : vector<16xf32>
    %88 = vector.multi_reduction <add>, %87, %cst_31 [1] : vector<16x32xf32> to vector<16xf32>
    %89 = vector.shape_cast %88 : vector<16xf32> to vector<16x1xf32>
    %cst_32 = arith.constant 3.200000e+01 : f32
    %90 = vector.broadcast %cst_32 : f32 to vector<16x1xf32>
    %91 = arith.divf %89, %90 : vector<16x1xf32>
    %92 = vector.broadcast %84 : vector<16x1xf32> to vector<16x32xf32>
    %93 = arith.subf %80, %92 : vector<16x32xf32>
    %cst_33 = arith.constant 9.99999974E-6 : f32
    %94 = vector.broadcast %cst_33 : f32 to vector<16x1xf32>
    %95 = arith.addf %91, %94 : vector<16x1xf32>
    %96 = math.rsqrt %95 : vector<16x1xf32>
    %97 = vector.broadcast %96 : vector<16x1xf32> to vector<16x32xf32>
    %98 = arith.mulf %93, %97 : vector<16x32xf32>
    %99 = vector.broadcast %10 : vector<1x32xf32> to vector<16x32xf32>
    %100 = arith.mulf %99, %98 : vector<16x32xf32>
    %101 = vector.broadcast %11 : vector<1x32xf32> to vector<16x32xf32>
    %102 = arith.addf %100, %101 : vector<16x32xf32>
    %cst_34 = arith.constant dense<0.000000e+00> : vector<16x64xf32>
    %103 = tpu.matmul %102, %2, %cst_34 {dimension_numbers = #tpu.dot_dimension_numbers<[1], [0], [0], [1], [0, 0, 1, 1], [], []>} : vector<16x32xf32>, vector<32x64xf32>, vector<16x64xf32> -> vector<16x64xf32>
    %104 = vector.broadcast %13 : vector<1x64xf32> to vector<16x64xf32>
    %105 = arith.addf %103, %104 : vector<16x64xf32>
    %cst_35 = arith.constant 0.000000e+00 : f32
    %106 = vector.broadcast %cst_35 : f32 to vector<16x64xf32>
    %107 = arith.maximumf %105, %106 : vector<16x64xf32>
    %cst_36 = arith.constant dense<0.000000e+00> : vector<16x32xf32>
    %108 = tpu.matmul %107, %4, %cst_36 {dimension_numbers = #tpu.dot_dimension_numbers<[1], [0], [0], [1], [0, 0, 1, 1], [], []>} : vector<16x64xf32>, vector<64x32xf32>, vector<16x32xf32> -> vector<16x32xf32>
    %109 = vector.broadcast %14 : vector<1x32xf32> to vector<16x32xf32>
    %110 = arith.addf %108, %109 : vector<16x32xf32>
    %c0_37 = arith.constant 0 : index
    %c0_38 = arith.constant 0 : index
    %111 = vector.load %arg3[%c0_37, %c0_38] : memref<16x32xf32, #tpu.memory_space<vmem>>, vector<16x32xf32>
    tpu.vector_store %arg3[%c0_37, %c0_38], %110 {strides = array<i32>} : memref<16x32xf32, #tpu.memory_space<vmem>>, vector<16x32xf32>,
    return
  }
  func.func @transform_0(%arg0: i32) -> (i32, i32) {
    %c0_i32 = arith.constant 0 : i32
    %c0_i32_0 = arith.constant 0 : i32
    %c0_i32_1 = arith.constant 0 : i32
    return %c0_i32, %c0_i32_0 : i32, i32
  }
  func.func @transform_1(%arg0: i32) -> (i32, i32) {
    %c0_i32 = arith.constant 0 : i32
    %c0_i32_0 = arith.constant 0 : i32
    %c0_i32_1 = arith.constant 0 : i32
    return %c0_i32, %c0_i32_0 : i32, i32
  }
  func.func @transform_2(%arg0: i32) -> (i32, i32) {
    %c0_i32 = arith.constant 0 : i32
    %c0_i32_0 = arith.constant 0 : i32
    %c0_i32_1 = arith.constant 0 : i32
    return %c0_i32, %c0_i32_0 : i32, i32
  }
}

</mosaic_0001>

<bundles_post_ra>
// kernel: block_forward.1
= control target key start
LH: loop header
LB: loop body
LE: loop exit
PB: predicated region body
PF: predicated region fallthrough
CT: control target
= control target key end

     0   :  { %7 = vsyncpa [#allocation3], 0  ;;  %s850_s0 = inlined_call_operand.hbm [shape: f32[16,32], index: 0, kind: input, shape index: {}]   ;;  %s851_s1 = inlined_call_operand.hbm [shape: f32[248,128], index: 1, kind: input, shape index: {}]   ;;  %s852_s2 = inlined_call_operand.hbm [shape: f32[16,32], index: 2, kind: output, shape index: {}]  }
   0x1   :  { %8 = vsyncpa [#allocation6], 0 }
   0x2   :  { %9 = vsyncpa [#allocation4], 0  ;;  %s14_s11 = sshll.u32 %s850_s0, 4  ;;  %s705_s12 = smov [#allocation2]   ;;  %s15_s11 = int_to_ptr.hbm [resolvable:$true] %s14_s11 }
   0x3   :  { %s16_s13 = sshll.u32 %s705_s12, 4  ;;  %s27_s16 = sshll.u32 %s851_s1, 4  ;;  %s17_s13 = int_to_ptr.vmem [resolvable:$true] %s16_s13  ;;  %s28_s16 = int_to_ptr.hbm [resolvable:$true] %s27_s16 }
   0x4   :  { %s706_s17 = smov 128   ;;  %s707_s18 = smov 8  }
   0x5   :  { %22 = dma.hbm_to_vmem [thread:$0]  %s15_s11, 256, %s17_s13, [#allocation3], %s706_s17, %s706_s17, %s707_s18  }
   0x6   :  { %s708_s19 = smov [#allocation5]  }
   0x7   :  { %s29_s20 = sshll.u32 %s708_s19, 4  ;;  %s30_s20 = int_to_ptr.vmem [resolvable:$true] %s29_s20 }
   0x8   :  { %35 = dma.hbm_to_vmem [thread:$0]  %s28_s16, 3968, %s30_s20, [#allocation6], %s706_s17, %s706_s17, %s707_s18  }
   0x9   :  { %699 = dma.done.wait [#allocation3], 256  }
   0xa   :  { %700 = vsyncadd [#allocation3], 4294967040 }
   0xb   :  { %701 = dma.done.wait [#allocation6], 3968  }
   0xc   :  { %702 = vsyncadd [#allocation6], 4294963328  ;;  %vm84_vm0 = vcmask 261120   ;;  %v44_v0 = vld [vmem:[#allocation2] sm:$0xff]  ;;  %v45_v2 = vld [vmem:[#allocation2 + $0x8] sm:$0xff]  ;;  %v709_v4 = vmov 32.0  }
   0xd   :  { %v85_v1 = vsel %vm84_vm0, %v44_v0, 0.0  ;;  %v88_v3 = vsel %vm84_vm0, %v45_v2, 0.0  ;;  %597 = vrcp.f32 %v709_v4  ;;  %v49_v21 = vld [vmem:[#allocation5 + $0x18] sm:$0xff]  ;;  %v48_v22 = vld [vmem:[#allocation5 + $0x10] sm:$0xff]  ;;  %v47_v23 = vld [vmem:[#allocation5 + $0x8] sm:$0xff]  ;;  %s710_s0 = smov 96  }
   0xe   :  { %86 = vadd.xlane.f32.xlu0 %v85_v1  ;;  %161 = vmatpush.msra.mxu0 %v49_v21  ;;  %v46_v24 = vld [vmem:[#allocation5] sm:$0xff]  ;;  %v589_v39 = vld [vmem:[#allocation5 + $0xf1] ss:$0 sm:$0xff]  ;;  %v590_v43 = vld [vmem:[#allocation5 + $0xf2] ss:$0 sm:$0xff]  ;;  %vm279_vm8 = vcmask 392448  }
   0xf   :  { %v591_v54 = vld [vmem:[#allocation5 + $0xf0] ss:$0 sm:$0xff]  ;;  %v758_v58 = vld [vmem:[#allocation5 + $0xd8] sm:$0xff]  ;;  %v764_v60 = vld [vmem:[#allocation5 + $0xc8] sm:$0xff]  ;;  %vm266_vm9 = vcmask 261248   ;;  %vm253_vm10 = vcmask 130048  }
  0x10   :  { %162 = vmatpush.msra.mxu0 %v48_v22  ;;  %350 = vmatpush.msra.mxu3 %v758_v58  ;;  %v761_v59 = vld [vmem:[#allocation5 + $0xd0] sm:$0xff]  ;;  %v767_v61 = vld [vmem:[#allocation5 + $0xc0] sm:$0xff]  ;;  %v770_v62 = vld [vmem:[#allocation5 + $0xb8] sm:$0xff]  ;;  %vm292_vm11 = vcmask 523648   ;;  %s711_s1 = smov 64   ;;  %vm309_vm12 = vcmask 392192  }
  0x11   :  { %v773_v63 = vld [vmem:[#allocation5 + $0xb0] sm:$0xff]  ;;  %v779_v1 = vld [vmem:[#allocation5 + $0xa0] sm:$0xff]  ;;  %vm312_vm13 = vcmask 523264   ;;  %s712_s21 = smov [#allocation7]   ;;  %s545_s25 = sshll.u32 %s852_s2, 4  ;;  %s546_s25 = int_to_ptr.hbm [resolvable:$true] %s545_s25 }
  0x12   :  { %163 = vmatpush.msra.mxu0 %v47_v23  ;;  %351 = vmatpush.msra.mxu3 %v761_v59  ;;  %s543_s22 = sshll.u32 %s712_s21, 4  ;;  %s544_s22 = int_to_ptr.vmem [resolvable:$true] %s543_s22 }
  0x13   :  { %v598_v5 = vpop.eup %597 }
  0x14   :  { %v92_v6 = vmul.f32 32.0, %v598_v5  ;;  %vm96_vm1 = vweird.f32 %v598_v5  ;;  %164 = vmatpush.msra.mxu0 %v46_v24  ;;  %352 = vmatpush.msra.mxu3 %v764_v60 }
  0x16   :  { %89 = vadd.xlane.f32.xlu0 %v88_v3  ;;  %v93_v7 = vsub.f32 1.0, %v92_v6  ;;  %353 = vmatpush.msra.mxu3 %v767_v61 }
  0x18   :  { %v94_v8 = vmul.f32 %v598_v5, %v93_v7  ;;  %354 = vmatpush.msra.mxu3 %v770_v62 }
  0x1a   :  { %v95_v9 = vadd.f32 %v598_v5, %v94_v8  ;;  %355 = vmatpush.msra.mxu3 %v773_v63 }
  0x1c   :  { %v742_v10 = vsel %vm96_vm1, %v598_v5, %v95_v9 }
  0x81   :  { %v87_v11 = vpop.xlane.xlu0 %86 }
  0x82   :  { %v98_v12 = vmul.f32 %v742_v10, %v87_v11 }
  0x84   :  { %v100_v13 = vsub.f32 %v44_v0, %v98_v12  ;;  %v776_v0 = vld [vmem:[#allocation5 + $0xa8] sm:$0xff] }
  0x85   :  { %356 = vmatpush.msra.mxu3 %v776_v0 }
  0x86   :  { %v102_v14 = vmul.f32 %v100_v13, %v100_v13 }
  0x87   :  { %357 = vmatpush.msra.mxu3 %v779_v1 }
  0x88   :  { %v104_v15 = vsel %vm84_vm0, %v102_v14, 0.0 }
  0x89   :  { %105 = vadd.xlane.f32.xlu1 %v104_v15  ;;  %v90_v16 = vpop.xlane.xlu0 %89 }
  0x8a   :  { %v99_v17 = vmul.f32 %v742_v10, %v90_v16 }
  0x8c   :  { %v101_v18 = vsub.f32 %v45_v2, %v99_v17 }
  0x8e   :  { %v103_v19 = vmul.f32 %v101_v18, %v101_v18 }
  0x90   :  { %v107_v20 = vsel %vm84_vm0, %v103_v19, 0.0  ;;  %v75_v19 = vld [vmem:[#allocation5 + $0xe8] sm:$0xff] }
  0x91   :  { %108 = vadd.xlane.f32.xlu1 %v107_v20 }
  0xfc   :  { %v106_v25 = vpop.xlane.xlu1 %105 }
  0xfd   :  { %v110_v26 = vmul.f32 %v106_v25, %v742_v10 }
  0xff   :  { %v112_v27 = vadd.f32 1e-05, %v110_v26 }
 0x101   :  { %599 = vrsqrt.f32 %v112_v27  ;;  %vm120_vm3 = vweird.f32 %v112_v27 }
 0x104   :  { %v109_v28 = vpop.xlane.xlu1 %108 }
 0x105   :  { %v111_v29 = vmul.f32 %v109_v28, %v742_v10 }
 0x107   :  { %v600_v30 = vpop.eup %599  ;;  %v113_v31 = vadd.f32 1e-05, %v111_v29 }
 0x108   :  { %v115_v32 = vmul.f32 %v600_v30, %v112_v27  ;;  %vm121_vm2 = vweird.f32 %v600_v30 }
 0x109   :  { %601 = vrsqrt.f32 %v113_v31  ;;  %vm122_vm4 = vmor %vm120_vm3, %vm121_vm2  ;;  %vm130_vm6 = vweird.f32 %v113_v31 }
 0x10a   :  { %v116_v33 = vmul.f32 %v600_v30, %v115_v32 }
 0x10c   :  { %v117_v34 = vmul.f32 0.5, %v116_v33 }
 0x10e   :  { %v118_v35 = vsub.f32 1.5, %v117_v34 }
 0x10f   :  { %v602_v36 = vpop.eup %601 }
 0x110   :  { %v119_v37 = vmul.f32 %v600_v30, %v118_v35  ;;  %v125_v38 = vmul.f32 %v602_v36, %v113_v31  ;;  %vm131_vm5 = vweird.f32 %v602_v36 }
 0x111   :  { %vm132_vm7 = vmor %vm130_vm6, %vm131_vm5 }
 0x112   :  { %v123_v40 = vsel %vm122_vm4, %v600_v30, %v119_v37  ;;  %v126_v41 = vmul.f32 %v602_v36, %v125_v38 }
 0x113   :  { %v134_v42 = vmul.f32 %v123_v40, %v100_v13  ;;  %v74_v13 = vld [vmem:[#allocation5 + $0xe0] sm:$0xff] }
 0x114   :  { %v127_v44 = vmul.f32 0.5, %v126_v41 }
 0x115   :  { %v137_v45 = vmul.f32 %v589_v39, %v134_v42 }
 0x116   :  { %v128_v46 = vsub.f32 1.5, %v127_v44 }
 0x117   :  { %v140_v47 = vadd.f32 %v590_v43, %v137_v45 }
 0x118   :  { %v129_v48 = vmul.f32 %v602_v36, %v128_v46 }
 0x119   :  { %559 = vmatmul.msk.f32.vlgmr.msra.gmra.mxu0 %vm84_vm0, %v140_v47 }
 0x11a   :  { %v133_v49 = vsel %vm132_vm7, %v602_v36, %v129_v48 }
 0x11b   :  { %v135_v50 = vmul.f32 %v133_v49, %v101_v18 }
 0x11d   :  { %v138_v51 = vmul.f32 %v589_v39, %v135_v50 }
 0x11f   :  { %v141_v52 = vadd.f32 %v590_v43, %v138_v51 }
 0x121   :  { %560 = vmatmul.msk.f32.gmra.mxu0 %vm84_vm0, %v141_v52 }
 0x196   :  { %v166_v53 = vpop.f32.mrf.mxu0 }
 0x197   :  { %v755_v57 = vadd.f32 %v591_v54, %v166_v53 }
 0x19e   :  { %v169_v55 = vpop.f32.mrf.mxu0 }
 0x19f   :  { %v752_v56 = vadd.f32 %v591_v54, %v169_v55 }
 0x1a1   :  { %176 = vrot.lane.b32.xlu2 %v752_v56, %s710_s0 }
 0x1a9   :  { %174 = vrot.lane.b32.xlu2 %v755_v57, %s710_s0 }
 0x1fb   :  { %v177_v2 = vpop.permute.xlu2 %176 }
 0x1fc   :  { %v187_v3 = vmul.f32 %v177_v2, %v758_v58  ;;  %v185_v6 = vmul.f32 %v177_v2, %v764_v60  ;;  %v183_v8 = vmul.f32 %v177_v2, %v770_v62  ;;  %v181_v11 = vmul.f32 %v177_v2, %v776_v0 }
 0x1fe   :  { %561 = vmatpush.xpose.msk.msra.mxu1 %vm84_vm0, %v187_v3 }
 0x203   :  { %v175_v4 = vpop.permute.xlu2 %174 }
 0x204   :  { %v186_v5 = vmul.f32 %v175_v4, %v761_v59  ;;  %v184_v7 = vmul.f32 %v175_v4, %v767_v61  ;;  %v182_v9 = vmul.f32 %v175_v4, %v773_v63  ;;  %v180_v12 = vmul.f32 %v175_v4, %v779_v1 }
 0x206   :  { %562 = vmatpush.xpose.msk.msra.mxu1 %vm84_vm0, %v186_v5 }
 0x20a   :  { %563 = vmatpush.xpose.msk.msra.mxu1 %vm84_vm0, %v185_v6 }
 0x20e   :  { %564 = vmatpush.xpose.msk.msra.mxu1 %vm84_vm0, %v184_v7 }
 0x212   :  { %565 = vmatpush.xpose.msk.msra.mxu1 %vm84_vm0, %v183_v8 }
 0x216   :  { %566 = vmatpush.xpose.msk.msra.mxu1 %vm84_vm0, %v182_v9 }
 0x21a   :  { %567 = vmatpush.xpose.msk.msra.mxu1 %vm84_vm0, %v181_v11 }
 0x21e   :  { %568 = vmatpush.xpose.msk.msra.mxu1 %vm84_vm0, %v180_v12 }
 0x221   :  { %569 = vmatmul.msk.f32.vlgmr.msra.gmra.mxu1 %vm84_vm0, %v755_v57 }
 0x229   :  { %570 = vmatmul.msk.f32.gmra.mxu1 %vm84_vm0, %v752_v56 }
 0x29e   :  { %v247_v14 = vpop.f32.mrf.mxu1 }
 0x29f   :  { %v248_v15 = vadd.f32 %v247_v14, %v74_v13 }
 0x2a1   :  { %v280_v16 = vsel %vm279_vm8, %v248_v15, -inf  ;;  %v267_v17 = vsel %vm266_vm9, %v248_v15, -inf  ;;  %v254_v18 = vsel %vm253_vm10, %v248_v15, -inf  ;;  %v293_v23 = vsel %vm292_vm11, %v248_v15, -inf }
 0x2a2   :  { %281 = vmax.xlane.f32.xlu2 %v280_v16  ;;  %268 = vmax.xlane.f32.xlu1 %v267_v17 }
 0x2a3   :  { %255 = vmax.xlane.f32.xlu0 %v254_v18 }
 0x2a6   :  { %v250_v20 = vpop.f32.mrf.mxu1 }
 0x2a7   :  { %v251_v21 = vadd.f32 %v250_v20, %v75_v19 }
 0x2a9   :  { %v257_v22 = vsel %vm253_vm10, %v251_v21, -inf  ;;  %v283_v24 = vsel %vm279_vm8, %v251_v21, -inf  ;;  %v270_v25 = vsel %vm266_vm9, %v251_v21, -inf  ;;  %v296_v26 = vsel %vm292_vm11, %v251_v21, -inf }
 0x2aa   :  { %258 = vmax.xlane.f32.xlu1 %v257_v22 }
 0x2ab   :  { %294 = vmax.xlane.f32.xlu0 %v293_v23 }
 0x2b2   :  { %284 = vmax.xlane.f32.xlu1 %v283_v24 }
 0x2b3   :  { %271 = vmax.xlane.f32.xlu0 %v270_v25 }
 0x2bb   :  { %297 = vmax.xlane.f32.xlu0 %v296_v26 }
 0x2cb   :  { %190 = vrot.lane.b32.xlu1 %v752_v56, %s711_s1 }
 0x2cf   :  { %188 = vrot.lane.b32.xlu0 %v755_v57, %s711_s1 }
 0x315   :  { %v282_v27 = vpop.xlane.xlu2 %281  ;;  %v269_v28 = vpop.xlane.xlu1 %268 }
 0x316   :  { %v273_v29 = vsub.f32 %v248_v15, %v269_v28  ;;  %v256_v30 = vpop.xlane.xlu0 %255  ;;  %v286_v32 = vsub.f32 %v248_v15, %v282_v27 }
 0x317   :  { %v260_v31 = vsub.f32 %v248_v15, %v256_v30 }
 0x318   :  { %v275_v33 = vmul.f32 1.442695, %v273_v29  ;;  %v288_v35 = vmul.f32 1.442695, %v286_v32 }
 0x319   :  { %v262_v34 = vmul.f32 1.442695, %v260_v31 }
 0x31a   :  { %603 = vpow2.f32 %v275_v33 }
 0x31b   :  { %605 = vpow2.f32 %v262_v34 }
 0x31c   :  { %607 = vpow2.f32 %v288_v35 }
 0x31d   :  { %v259_v36 = vpop.xlane.xlu1 %258 }
 0x31e   :  { %v295_v37 = vpop.xlane.xlu0 %294  ;;  %v261_v46 = vsub.f32 %v251_v21, %v259_v36 }
 0x31f   :  { %v299_v38 = vsub.f32 %v248_v15, %v295_v37 }
 0x320   :  { %v604_v40 = vpop.eup %603  ;;  %v264_v53 = vmul.f32 1.442695, %v261_v46 }
 0x321   :  { %v301_v39 = vmul.f32 1.442695, %v299_v38  ;;  %v606_v41 = vpop.eup %605 }
 0x322   :  { %v608_v43 = vpop.eup %607  ;;  %v305_v45 = vsel %vm253_vm10, %v606_v41, %v604_v40 }
 0x323   :  { %609 = vpow2.f32 %v301_v39  ;;  %v307_v51 = vsel %vm84_vm0, %v305_v45, %v608_v43 }
 0x325   :  { %v285_v42 = vpop.xlane.xlu1 %284 }
 0x326   :  { %v272_v44 = vpop.xlane.xlu0 %271  ;;  %v287_v48 = vsub.f32 %v251_v21, %v285_v42  ;;  %v592_v42 = vld [vmem:[#allocation5 + $0xf5] ss:$0 sm:$0xff] }
 0x327   :  { %v274_v47 = vsub.f32 %v251_v21, %v272_v44 }
 0x328   :  { %v290_v54 = vmul.f32 1.442695, %v287_v48 }
 0x329   :  { %v610_v49 = vpop.eup %609  ;;  %v277_v50 = vmul.f32 1.442695, %v274_v47 }
 0x32a   :  { %v310_v52 = vsel %vm309_vm12, %v307_v51, %v610_v49 }
 0x32b   :  { %573 = vmatmul.msk.f32.vlgmr.msra.gmra.mxu3 %vm312_vm13, %v310_v52  ;;  %611 = vpow2.f32 %v277_v50 }
 0x32c   :  { %613 = vpow2.f32 %v264_v53 }
 0x32d   :  { %615 = vpow2.f32 %v290_v54 }
 0x32e   :  { %v298_v55 = vpop.xlane.xlu0 %297 }
 0x32f   :  { %v300_v56 = vsub.f32 %v251_v21, %v298_v55 }
 0x331   :  { %v303_v57 = vmul.f32 1.442695, %v300_v56  ;;  %v612_v2 = vpop.eup %611 }
 0x332   :  { %v614_v3 = vpop.eup %613 }
 0x333   :  { %617 = vpow2.f32 %v303_v57  ;;  %v616_v4 = vpop.eup %615  ;;  %v306_v5 = vsel %vm253_vm10, %v614_v3, %v612_v2  ;;  %v53_v3 = vld [vmem:[#allocation5 + $0x38] sm:$0xff] }
 0x334   :  { %v308_v7 = vsel %vm84_vm0, %v306_v5, %v616_v4  ;;  %v52_v4 = vld [vmem:[#allocation5 + $0x30] sm:$0xff]  ;;  %v51_v5 = vld [vmem:[#allocation5 + $0x28] sm:$0xff] }
 0x339   :  { %v618_v6 = vpop.eup %617 }
 0x33a   :  { %v311_v8 = vsel %vm309_vm12, %v308_v7, %v618_v6  ;;  %v50_v6 = vld [vmem:[#allocation5 + $0x20] sm:$0xff] }
 0x33b   :  { %574 = vmatmul.msk.f32.gmra.mxu3 %vm312_vm13, %v311_v8 }
 0x33d   :  { %v191_v9 = vpop.permute.xlu1 %190 }
 0x33e   :  { %v201_v11 = vmul.f32 %v191_v9, %v758_v58  ;;  %v199_v14 = vmul.f32 %v191_v9, %v764_v60  ;;  %v197_v16 = vmul.f32 %v191_v9, %v770_v62  ;;  %v195_v18 = vmul.f32 %v191_v9, %v776_v0  ;;  %v56_v60 = vld [vmem:[#allocation5 + $0x50] sm:$0xff]  ;;  %v54_v62 = vld [vmem:[#allocation5 + $0x40] sm:$0xff] }
 0x340   :  { %327 = vmatpush.msra.mxu2 %v201_v11  ;;  %v65_v11 = vld [vmem:[#allocation5 + $0x98] sm:$0xff] }
 0x341   :  { %v189_v12 = vpop.permute.xlu0 %188  ;;  %522 = vmatpush.msrb.mxu3 %v65_v11 }
 0x342   :  { %v200_v13 = vmul.f32 %v189_v12, %v761_v59  ;;  %v198_v15 = vmul.f32 %v189_v12, %v767_v61  ;;  %v196_v17 = vmul.f32 %v189_v12, %v773_v63  ;;  %v194_v58 = vmul.f32 %v189_v12, %v779_v1  ;;  %v57_v59 = vld [vmem:[#allocation5 + $0x58] sm:$0xff]  ;;  %v55_v61 = vld [vmem:[#allocation5 + $0x48] sm:$0xff]  ;;  %v64_v12 = vld [vmem:[#allocation5 + $0x90] sm:$0xff] }
 0x343   :  { %414 = vmatpush.msrb.mxu0 %v57_v59  ;;  %523 = vmatpush.msrb.mxu3 %v64_v12 }
 0x344   :  { %328 = vmatpush.msra.mxu2 %v200_v13  ;;  %v63_v13 = vld [vmem:[#allocation5 + $0x88] sm:$0xff] }
 0x345   :  { %415 = vmatpush.msrb.mxu0 %v56_v60  ;;  %524 = vmatpush.msrb.mxu3 %v63_v13  ;;  %v60_v60 = vld [vmem:[#allocation5 + $0x70] sm:$0xff] }
 0x346   :  { %329 = vmatpush.msra.mxu2 %v199_v14 }
 0x347   :  { %416 = vmatpush.msrb.mxu0 %v55_v61 }
 0x348   :  { %330 = vmatpush.msra.mxu2 %v198_v15 }
 0x349   :  { %417 = vmatpush.msrb.mxu0 %v54_v62 }
 0x34a   :  { %331 = vmatpush.msra.mxu2 %v197_v16  ;;  %v62_v16 = vld [vmem:[#allocation5 + $0x80] sm:$0xff] }
 0x34b   :  { %525 = vmatpush.msrb.mxu3 %v62_v16 }
 0x34c   :  { %332 = vmatpush.msra.mxu2 %v196_v17 }
 0x34e   :  { %333 = vmatpush.msra.mxu2 %v195_v18 }
 0x350   :  { %334 = vmatpush.msra.mxu2 %v194_v58  ;;  %v61_v58 = vld [vmem:[#allocation5 + $0x78] sm:$0xff] }
 0x351   :  { %571 = vmatmul.msk.f32.vlgmr.msra.gmra.mxu2 %vm312_vm13, %v310_v52  ;;  %526 = vmatpush.msrb.mxu3 %v61_v58 }
 0x352   :  { %494 = vmatpush.msrb.mxu2 %v53_v3 }
 0x353   :  { %527 = vmatpush.msrb.mxu3 %v60_v60 }
 0x354   :  { %495 = vmatpush.msrb.mxu2 %v52_v4 }
 0x356   :  { %496 = vmatpush.msrb.mxu2 %v51_v5 }
 0x358   :  { %497 = vmatpush.msrb.mxu2 %v50_v6 }
 0x359   :  { %572 = vmatmul.msk.f32.gmra.mxu2 %vm312_vm13, %v311_v8 }
 0x3ae   :  { %v359_v63 = vpop.f32.mrf.mxu3 }
 0x3af   :  { %619 = vrcp.f32 %v359_v63  ;;  %v376_v26 = vand.u32 2147483648, %v359_v63  ;;  %vm370_vm15 = vweird.f32 %v359_v63  ;;  %v374_v27 = vand.u32 2147483647, %v359_v63 }
 0x3b1   :  { %v377_v30 = vor.u32 1.1754944e-38, %v376_v26  ;;  %vm375_vm2 = vcmp.eq.f32.partialorder %v374_v27, 8.507059e+37 }
 0x3b5   :  { %v620_v19 = vpop.eup %619 }
 0x3b6   :  { %v366_v20 = vmul.f32 %v620_v19, %v359_v63  ;;  %vm371_vm14 = vweird.f32 %v620_v19 }
 0x3b7   :  { %vm372_vm1 = vmor %vm370_vm15, %vm371_vm14 }
 0x3b8   :  { %v367_v1 = vsub.f32 1.0, %v366_v20 }
 0x3ba   :  { %v368_v23 = vmul.f32 %v620_v19, %v367_v1 }
 0x3bc   :  { %v369_v25 = vadd.f32 %v620_v19, %v368_v23  ;;  %v594_v23 = vld [vmem:[#allocation5 + $0xf4] ss:$0 sm:$0xff] }
 0x3be   :  { %v362_v0 = vpop.f32.mrf.mxu3  ;;  %v373_v28 = vsel %vm372_vm1, %v620_v19, %v369_v25 }
 0x3bf   :  { %621 = vrcp.f32 %v362_v0  ;;  %v378_v32 = vsel %vm375_vm2, %v377_v30, %v373_v28  ;;  %v390_v35 = vand.u32 2147483648, %v362_v0  ;;  %vm384_vm4 = vweird.f32 %v362_v0 }
 0x3c0   :  { %v388_v36 = vand.u32 2147483647, %v362_v0 }
 0x3c1   :  { %v391_v38 = vor.u32 1.1754944e-38, %v390_v35  ;;  %v595_v35 = vld [vmem:[#allocation5 + $0xf6] ss:$0 sm:$0xff] }
 0x3c2   :  { %vm389_vm6 = vcmp.eq.f32.partialorder %v388_v36, 8.507059e+37 }
 0x3c5   :  { %v622_v21 = vpop.eup %621 }
 0x3c6   :  { %v380_v22 = vmul.f32 %v622_v21, %v362_v0  ;;  %vm385_vm3 = vweird.f32 %v622_v21 }
 0x3c7   :  { %vm386_vm5 = vmor %vm384_vm4, %vm385_vm3 }
 0x3c8   :  { %v381_v24 = vsub.f32 1.0, %v380_v22 }
 0x3ca   :  { %v382_v29 = vmul.f32 %v622_v21, %v381_v24 }
 0x3cc   :  { %v383_v34 = vadd.f32 %v622_v21, %v382_v29 }
 0x3ce   :  { %v387_v37 = vsel %vm386_vm5, %v622_v21, %v383_v34  ;;  %v58_v34 = vld [vmem:[#allocation5 + $0x60] sm:$0xff] }
 0x3cf   :  { %v392_v40 = vsel %vm389_vm6, %v391_v38, %v387_v37 }
 0x3d4   :  { %v336_v31 = vpop.f32.mrf.mxu2 }
 0x3d5   :  { %v393_v33 = vmul.f32 %v378_v32, %v336_v31 }
 0x3d7   :  { %575 = vmatmul.msk.f32.vlgmr.msrb.gmra.mxu0 %vm84_vm0, %v393_v33  ;;  %v59_v33 = vld [vmem:[#allocation5 + $0x68] sm:$0xff] }
 0x3d8   :  { %528 = vmatpush.msrb.mxu3 %v59_v33 }
 0x3da   :  { %529 = vmatpush.msrb.mxu3 %v58_v34 }
 0x3dc   :  { %v339_v39 = vpop.f32.mrf.mxu2 }
 0x3dd   :  { %v394_v41 = vmul.f32 %v392_v40, %v339_v39 }
 0x3df   :  { %576 = vmatmul.msk.f32.gmra.mxu0 %vm84_vm0, %v394_v41 }
 0x454   :  { %v419_v43 = vpop.f32.mrf.mxu0 }
 0x455   :  { %v420_v44 = vadd.f32 %v592_v42, %v419_v43 }
 0x457   :  { %v425_v45 = vsel %vm84_vm0, %v420_v44, 0.0 }
 0x458   :  { %426 = vadd.xlane.f32.xlu2 %v425_v45 }
 0x45c   :  { %v422_v46 = vpop.f32.mrf.mxu0 }
 0x45d   :  { %v423_v47 = vadd.f32 %v592_v42, %v422_v46  ;;  %v596_v42 = vld [vmem:[#allocation5 + $0xf7] ss:$0 sm:$0xff] }
 0x45f   :  { %v428_v48 = vsel %vm84_vm0, %v423_v47, 0.0 }
 0x460   :  { %429 = vadd.xlane.f32.xlu1 %v428_v48 }
 0x4cb   :  { %v427_v49 = vpop.xlane.xlu2 %426 }
 0x4cc   :  { %v431_v50 = vmul.f32 %v427_v49, %v742_v10 }
 0x4ce   :  { %v433_v51 = vsub.f32 %v420_v44, %v431_v50 }
 0x4d0   :  { %v435_v52 = vmul.f32 %v433_v51, %v433_v51 }
 0x4d2   :  { %v437_v53 = vsel %vm84_vm0, %v435_v52, 0.0 }
 0x4d3   :  { %438 = vadd.xlane.f32.xlu2 %v437_v53  ;;  %v430_v54 = vpop.xlane.xlu1 %429 }
 0x4d4   :  { %v432_v55 = vmul.f32 %v430_v54, %v742_v10 }
 0x4d6   :  { %v434_v56 = vsub.f32 %v423_v47, %v432_v55 }
 0x4d8   :  { %v436_v57 = vmul.f32 %v434_v56, %v434_v56 }
 0x4da   :  { %v440_v2 = vsel %vm84_vm0, %v436_v57, 0.0 }
 0x4db   :  { %441 = vadd.xlane.f32.xlu0 %v440_v2 }
 0x546   :  { %v439_v7 = vpop.xlane.xlu2 %438 }
 0x547   :  { %v443_v8 = vmul.f32 %v439_v7, %v742_v10 }
 0x549   :  { %v445_v9 = vadd.f32 1e-05, %v443_v8 }
 0x54b   :  { %623 = vrsqrt.f32 %v445_v9  ;;  %vm453_vm8 = vweird.f32 %v445_v9 }
 0x54e   :  { %v442_v14 = vpop.xlane.xlu0 %441 }
 0x54f   :  { %v444_v15 = vmul.f32 %v442_v14, %v742_v10  ;;  %v593_v10 = vld [vmem:[#allocation5 + $0xf3] ss:$0 sm:$0xff] }
 0x551   :  { %v624_v17 = vpop.eup %623  ;;  %v446_v18 = vadd.f32 1e-05, %v444_v15 }
 0x552   :  { %v448_v59 = vmul.f32 %v624_v17, %v445_v9  ;;  %vm454_vm7 = vweird.f32 %v624_v17 }
 0x553   :  { %625 = vrsqrt.f32 %v446_v18  ;;  %vm455_vm9 = vmor %vm453_vm8, %vm454_vm7  ;;  %vm463_vm11 = vweird.f32 %v446_v18 }
 0x554   :  { %v449_v61 = vmul.f32 %v624_v17, %v448_v59 }
 0x556   :  { %v450_v62 = vmul.f32 0.5, %v449_v61 }
 0x558   :  { %v451_v63 = vsub.f32 1.5, %v450_v62 }
 0x559   :  { %v626_v19 = vpop.eup %625 }
 0x55a   :  { %v452_v0 = vmul.f32 %v624_v17, %v451_v63  ;;  %v458_v20 = vmul.f32 %v626_v19, %v446_v18  ;;  %vm464_vm10 = vweird.f32 %v626_v19 }
 0x55b   :  { %vm465_vm12 = vmor %vm463_vm11, %vm464_vm10 }
 0x55c   :  { %v456_v1 = vsel %vm455_vm9, %v624_v17, %v452_v0  ;;  %v459_v21 = vmul.f32 %v626_v19, %v458_v20 }
 0x55d   :  { %v467_v22 = vmul.f32 %v456_v1, %v433_v51 }
 0x55e   :  { %v460_v24 = vmul.f32 0.5, %v459_v21 }
 0x55f   :  { %v470_v25 = vmul.f32 %v593_v10, %v467_v22 }
 0x560   :  { %v461_v26 = vsub.f32 1.5, %v460_v24 }
 0x561   :  { %v473_v27 = vadd.f32 %v594_v23, %v470_v25 }
 0x562   :  { %v462_v28 = vmul.f32 %v626_v19, %v461_v26 }
 0x563   :  { %577 = vmatmul.msk.f32.vlgmr.msrb.gmra.mxu2 %vm84_vm0, %v473_v27 }
 0x564   :  { %v466_v29 = vsel %vm465_vm12, %v626_v19, %v462_v28 }
 0x565   :  { %v468_v30 = vmul.f32 %v466_v29, %v434_v56 }
 0x567   :  { %v471_v31 = vmul.f32 %v593_v10, %v468_v30 }
 0x569   :  { %v474_v32 = vadd.f32 %v594_v23, %v471_v31 }
 0x56b   :  { %578 = vmatmul.msk.f32.gmra.mxu2 %vm84_vm0, %v474_v32 }
 0x5e6   :  { %v499_v36 = vpop.f32.mrf.mxu2 }
 0x5e7   :  { %v500_v37 = vadd.f32 %v595_v35, %v499_v36 }
 0x5e9   :  { %v505_v38 = vmax.f32 %v500_v37, 0.0 }
 0x5eb   :  { %579 = vmatmul.msk.f32.vlgmr.msrb.gmra.mxu3 %vm312_vm13, %v505_v38 }
 0x5ee   :  { %v502_v39 = vpop.f32.mrf.mxu2 }
 0x5ef   :  { %v503_v40 = vadd.f32 %v595_v35, %v502_v39 }
 0x5f1   :  { %v506_v41 = vmax.f32 %v503_v40, 0.0 }
 0x5f3   :  { %580 = vmatmul.msk.f32.gmra.mxu3 %vm312_vm13, %v506_v41 }
 0x66e   :  { %v531_v43 = vpop.f32.mrf.mxu3 }
 0x66f   :  { %v532_v44 = vadd.f32 %v596_v42, %v531_v43 }
 0x671   :  { %537 = vst.msk [vmem:[#allocation7] sm:$0xff] %vm84_vm0, %v532_v44 }
 0x676   :  { %v534_v45 = vpop.f32.mrf.mxu3 }
 0x677   :  { %v535_v46 = vadd.f32 %v596_v42, %v534_v45 }
 0x679   :  { %538 = vst.msk [vmem:[#allocation7 + $0x8] sm:$0xff] %vm84_vm0, %v535_v46 }
 0x67a   :  { %551 = dma.vmem_to_hbm [thread:$0]  %s544_s22, 256, %s546_s25, [#allocation4], %s706_s17, %s706_s17, %s707_s18  }
 0x67b   :  { %703 = dma.done.wait [#allocation4], 256  }
 0x67c   :  { %704 = vsyncadd [#allocation4], 4294967040 }
 0x67d   :  { %556 = vsyncpa [#allocation3], 1 }
 0x67e   :  { %557 = vsyncpa [#allocation6], 1 }
 0x67f   :  { %558 = vsyncpa [#allocation4], 1 }

</bundles_post_ra>
